<compile_context>
chip_gen: v7x
topology: tpu7x:2x2x1
jax: 0.10.0
libtpu: 0.0.40
codegen_flags: <defaults>
</compile_context>

<pallas_src>
import jax
import jax.numpy as jnp
from jax.experimental import pallas as pl
from jax.experimental.pallas import tpu as pltpu


def _gammanet_kernel(t_ref, w1_ref, b1_ref, w2_ref, b2_ref, w3_ref, b3_ref, o_ref):
    # Transposed layout: features on sublanes, batch on lanes.
    t = t_ref[...]                                     # (n_in, bt)  f32
    gate = jnp.exp(-t)                                 # EUP; overlaps matmuls below

    n_in = t_ref.shape[0]

    # ---- layer 1: (n_hidden, n_in) @ (n_in, bt) ----
    if n_in <= 8:
        # Tiny contraction: VPU broadcast-MACs instead of a K=4 padded MXU matmul.
        w1 = w1_ref[...]                               # (n_hidden, n_in)
        h1 = b1_ref[...]                               # (n_hidden, 1) -> broadcasts
        for i in range(n_in):                          # static trace-time unroll
            h1 = h1 + w1[:, i:i + 1] * t[i:i + 1, :]   # (n_hidden,1)*(1,bt)
    else:
        h1 = jnp.dot(w1_ref[...], t, preferred_element_type=jnp.float32) + b1_ref[...]
    h1 = jnp.maximum(h1, 0.0)                          # ReLU (module names it "sigmoid")

    # ---- layer 2: (n_hidden, n_hidden) @ (n_hidden, bt) ----
    h2 = jnp.dot(w2_ref[...], h1, preferred_element_type=jnp.float32) + b2_ref[...]
    h2 = jnp.maximum(h2, 0.0)

    # ---- layer 3, square, exp(-t) gate (lane-dense store) ----
    out = jnp.dot(w3_ref[...], h2, preferred_element_type=jnp.float32) + b3_ref[...]
    o_ref[...] = (out * out * gate).astype(o_ref.dtype)


def _pick_batch_tile(B):
    """Large lane-aligned batch tile: amortizes ~0.35us/step overhead and, when
    possible, gives the 'parallel' axis >=2 steps so v7x uses both TCs."""
    if B % 128 != 0:
        return B                       # toy / ragged batch: single full-extent block
    for cand in (2048, 1024, 512, 256, 128):
        if B % cand == 0 and B // cand >= 2:
            return cand
    return B


def _vmem_limit_bytes(batch_tile, n_in, n_hidden, n_out):
    f32 = 4
    streamed = 2 * 2 * batch_tile * (n_in + n_out) * f32          # dbl-buffered t / out tiles
    resident = 2 * (n_in * n_hidden + n_hidden * n_hidden
                    + n_hidden * n_out + 2 * n_hidden + n_out) * f32
    temps = 3 * batch_tile * n_hidden * f32                       # h1 / h2 / gate temporaries
    est = 2 * (streamed + resident + temps)                       # 2x headroom
    return int(min(max(est, 8 << 20), 32 << 20))                  # safe on v7x's 64 MiB VMEM


def gammanet_forward(t, w1, b1, w2, b2, w3, b3, *, batch_tile=None):
    """t: (B, n_in). Weights in torch layout: wk (fan_out, fan_in), bk (fan_out,)."""
    B, n_in = t.shape
    n_hidden = w1.shape[0]
    n_out = w3.shape[0]
    assert n_out == n_in, "exp(-t) gate requires n_output == n_input (as in the module)"
    assert w1.shape == (n_hidden, n_in)
    assert w2.shape == (n_hidden, n_hidden)
    assert w3.shape == (n_out, n_hidden)

    if batch_tile is None:
        batch_tile = _pick_batch_tile(B)
    assert B % batch_tile == 0
    assert batch_tile == B or batch_tile % 128 == 0, "batch tile must be lane-aligned"

    f32 = jnp.float32
    t_T = t.T.astype(f32)                              # (n_in, B): batch on lanes
    w1 = w1.astype(f32)
    w2 = w2.astype(f32)
    w3 = w3.astype(f32)
    b1c = b1.reshape(n_hidden, 1).astype(f32)
    b2c = b2.reshape(n_hidden, 1).astype(f32)
    b3c = b3.reshape(n_out, 1).astype(f32)

    resident = lambda shape: pl.BlockSpec(shape, lambda i: (0, 0))  # stays in VMEM across grid

    out_T = pl.pallas_call(
        _gammanet_kernel,
        out_shape=jax.ShapeDtypeStruct((n_out, B), f32),
        grid_spec=pltpu.PrefetchScalarGridSpec(
            num_scalar_prefetch=0,
            grid=(B // batch_tile,),
            in_specs=[
                pl.BlockSpec((n_in, batch_tile), lambda i: (0, i)),   # t^T, batch-tiled
                resident((n_hidden, n_in)),                           # w1
                resident((n_hidden, 1)),                              # b1
                resident((n_hidden, n_hidden)),                       # w2
                resident((n_hidden, 1)),                              # b2
                resident((n_out, n_hidden)),                          # w3
                resident((n_out, 1)),                                 # b3
            ],
            out_specs=pl.BlockSpec((n_out, batch_tile), lambda i: (0, i)),
        ),
        compiler_params=pltpu.CompilerParams(
            dimension_semantics=("parallel",),
            vmem_limit_bytes=_vmem_limit_bytes(batch_tile, n_in, n_hidden, n_out),
        ),
    )(t_T, w1, b1c, w2, b2c, w3, b3c)

    return out_T.T                                     # back to (B, n_out)


def _init_linear(key, fan_in, fan_out):
    # torch.nn.Linear-style U(-1/sqrt(fan_in), +1/sqrt(fan_in)); weight is (fan_out, fan_in).
    kw, kb = jax.random.split(key)
    bound = 1.0 / jnp.sqrt(jnp.float32(fan_in))
    w = jax.random.uniform(kw, (fan_out, fan_in), jnp.float32, -bound, bound)
    b = jax.random.uniform(kb, (fan_out,), jnp.float32, -bound, bound)
    return w, b


def _reference(t, w1, b1, w2, b2, w3, b3):
    h1 = jnp.maximum(t @ w1.T + b1, 0.0)
    h2 = jnp.maximum(h1 @ w2.T + b2, 0.0)
    out = (h2 @ w3.T + b3) ** 2
    return out * jnp.exp(-t)


if __name__ == "__main__":
    # n_input == n_output so `out * exp(-t)` is elementwise, as in the module.
    n_input, n_hidden, n_output = 4, 32, 4

    key = jax.random.PRNGKey(0)
    kt, k1, k2, k3, kt2 = jax.random.split(key, 5)

    w1, b1 = _init_linear(k1, n_input, n_hidden)
    w2, b2 = _init_linear(k2, n_hidden, n_hidden)
    w3, b3 = _init_linear(k3, n_hidden, n_output)

    # Small module-consistent batch (single full-extent block path).
    t_small = jax.random.uniform(kt, (8, n_input), jnp.float32, 0.0, 2.0)
    y = jax.block_until_ready(gammanet_forward(t_small, w1, b1, w2, b2, w3, b3))
    y_ref = _reference(t_small, w1, b1, w2, b2, w3, b3)
    assert jnp.allclose(y, y_ref, atol=1e-5, rtol=1e-5), "Pallas mismatch (small batch)"

    # Lane-aligned batch: exercises the tiled / pipelined multi-step grid path.
    t_big = jax.random.uniform(kt2, (256, n_input), jnp.float32, 0.0, 2.0)
    y2 = jax.block_until_ready(gammanet_forward(t_big, w1, b1, w2, b2, w3, b3))
    y2_ref = _reference(t_big, w1, b1, w2, b2, w3, b3)
    assert jnp.allclose(y2, y2_ref, atol=1e-5, rtol=1e-5), "Pallas mismatch (tiled batch)"

    print("KERNEL_OK")
</pallas_src>

<mosaic_0001>
module attributes {stable_mosaic.version = 11 : i64} {
  func.func @_gammanet_kernel(%arg0: i32, %arg1: memref<4x8xf32, #tpu.memory_space<vmem>>, %arg2: memref<32x4xf32, #tpu.memory_space<vmem>>, %arg3: memref<32x1xf32, #tpu.memory_space<vmem>>, %arg4: memref<32x32xf32, #tpu.memory_space<vmem>>, %arg5: memref<32x1xf32, #tpu.memory_space<vmem>>, %arg6: memref<4x32xf32, #tpu.memory_space<vmem>>, %arg7: memref<4x1xf32, #tpu.memory_space<vmem>>, %arg8: memref<4x8xf32, #tpu.memory_space<vmem>>) attributes {dimension_semantics = [#tpu.dimension_semantics<parallel>], iteration_bounds = array<i64: 1>, scalar_prefetch = 0 : i64, scratch_operands = 0 : i64, tpu.core_type = #tpu.core_type<tc>, window_params = [{transform_indices = @transform_0, window_bounds = array<i64: 4, 8>}, {pipeline_mode = #tpu.pipeline_mode<synchronous>, transform_indices = @transform_1, window_bounds = array<i64: 32, 4>}, {pipeline_mode = #tpu.pipeline_mode<synchronous>, transform_indices = @transform_2, window_bounds = array<i64: 32, 1>}, {pipeline_mode = #tpu.pipeline_mode<synchronous>, transform_indices = @transform_3, window_bounds = array<i64: 32, 32>}, {pipeline_mode = #tpu.pipeline_mode<synchronous>, transform_indices = @transform_4, window_bounds = array<i64: 32, 1>}, {pipeline_mode = #tpu.pipeline_mode<synchronous>, transform_indices = @transform_5, window_bounds = array<i64: 4, 32>}, {pipeline_mode = #tpu.pipeline_mode<synchronous>, transform_indices = @transform_6, window_bounds = array<i64: 4, 1>}, {transform_indices = @transform_7, window_bounds = array<i64: 4, 8>}]} {
    %c0 = arith.constant 0 : index
    %c0_0 = arith.constant 0 : index
    %0 = vector.load %arg1[%c0, %c0_0] : memref<4x8xf32, #tpu.memory_space<vmem>>, vector<4x8xf32>
    %cst = arith.constant 0.000000e+00 : f32
    %1 = vector.broadcast %cst : f32 to vector<4x8xf32>
    %2 = arith.subf %1, %0 : vector<4x8xf32>
    %3 = math.exp %2 : vector<4x8xf32>
    %c0_1 = arith.constant 0 : index
    %c0_2 = arith.constant 0 : index
    %4 = vector.load %arg2[%c0_1, %c0_2] : memref<32x4xf32, #tpu.memory_space<vmem>>, vector<32x4xf32>
    %c0_3 = arith.constant 0 : index
    %c0_4 = arith.constant 0 : index
    %5 = vector.load %arg3[%c0_3, %c0_4] : memref<32x1xf32, #tpu.memory_space<vmem>>, vector<32x1xf32>
    %6 = vector.extract_strided_slice %4 {offsets = [0, 0], sizes = [32, 1], strides = [1, 1]} : vector<32x4xf32> to vector<32x1xf32>
    %7 = vector.extract_strided_slice %0 {offsets = [0, 0], sizes = [1, 8], strides = [1, 1]} : vector<4x8xf32> to vector<1x8xf32>
    %8 = vector.broadcast %6 : vector<32x1xf32> to vector<32x8xf32>
    %9 = vector.broadcast %7 : vector<1x8xf32> to vector<32x8xf32>
    %10 = arith.mulf %8, %9 : vector<32x8xf32>
    %11 = vector.broadcast %5 : vector<32x1xf32> to vector<32x8xf32>
    %12 = arith.addf %11, %10 : vector<32x8xf32>
    %13 = vector.extract_strided_slice %4 {offsets = [0, 1], sizes = [32, 1], strides = [1, 1]} : vector<32x4xf32> to vector<32x1xf32>
    %14 = vector.extract_strided_slice %0 {offsets = [1, 0], sizes = [1, 8], strides = [1, 1]} : vector<4x8xf32> to vector<1x8xf32>
    %15 = vector.broadcast %13 : vector<32x1xf32> to vector<32x8xf32>
    %16 = vector.broadcast %14 : vector<1x8xf32> to vector<32x8xf32>
    %17 = arith.mulf %15, %16 : vector<32x8xf32>
    %18 = arith.addf %12, %17 : vector<32x8xf32>
    %19 = vector.extract_strided_slice %4 {offsets = [0, 2], sizes = [32, 1], strides = [1, 1]} : vector<32x4xf32> to vector<32x1xf32>
    %20 = vector.extract_strided_slice %0 {offsets = [2, 0], sizes = [1, 8], strides = [1, 1]} : vector<4x8xf32> to vector<1x8xf32>
    %21 = vector.broadcast %19 : vector<32x1xf32> to vector<32x8xf32>
    %22 = vector.broadcast %20 : vector<1x8xf32> to vector<32x8xf32>
    %23 = arith.mulf %21, %22 : vector<32x8xf32>
    %24 = arith.addf %18, %23 : vector<32x8xf32>
    %25 = vector.extract_strided_slice %4 {offsets = [0, 3], sizes = [32, 1], strides = [1, 1]} : vector<32x4xf32> to vector<32x1xf32>
    %26 = vector.extract_strided_slice %0 {offsets = [3, 0], sizes = [1, 8], strides = [1, 1]} : vector<4x8xf32> to vector<1x8xf32>
    %27 = vector.broadcast %25 : vector<32x1xf32> to vector<32x8xf32>
    %28 = vector.broadcast %26 : vector<1x8xf32> to vector<32x8xf32>
    %29 = arith.mulf %27, %28 : vector<32x8xf32>
    %30 = arith.addf %24, %29 : vector<32x8xf32>
    %cst_5 = arith.constant 0.000000e+00 : f32
    %31 = vector.broadcast %cst_5 : f32 to vector<32x8xf32>
    %32 = arith.maximumf %30, %31 : vector<32x8xf32>
    %c0_6 = arith.constant 0 : index
    %c0_7 = arith.constant 0 : index
    %33 = vector.load %arg4[%c0_6, %c0_7] : memref<32x32xf32, #tpu.memory_space<vmem>>, vector<32x32xf32>
    %cst_8 = arith.constant dense<0.000000e+00> : vector<32x8xf32>
    %34 = tpu.matmul %33, %32, %cst_8 {dimension_numbers = #tpu.dot_dimension_numbers<[1], [0], [0], [1], [0, 0, 1, 1], [], []>} : vector<32x32xf32>, vector<32x8xf32>, vector<32x8xf32> -> vector<32x8xf32>
    %c0_9 = arith.constant 0 : index
    %c0_10 = arith.constant 0 : index
    %35 = vector.load %arg5[%c0_9, %c0_10] : memref<32x1xf32, #tpu.memory_space<vmem>>, vector<32x1xf32>
    %36 = vector.broadcast %35 : vector<32x1xf32> to vector<32x8xf32>
    %37 = arith.addf %34, %36 : vector<32x8xf32>
    %cst_11 = arith.constant 0.000000e+00 : f32
    %38 = vector.broadcast %cst_11 : f32 to vector<32x8xf32>
    %39 = arith.maximumf %37, %38 : vector<32x8xf32>
    %c0_12 = arith.constant 0 : index
    %c0_13 = arith.constant 0 : index
    %40 = vector.load %arg6[%c0_12, %c0_13] : memref<4x32xf32, #tpu.memory_space<vmem>>, vector<4x32xf32>
    %cst_14 = arith.constant dense<0.000000e+00> : vector<4x8xf32>
    %41 = tpu.matmul %40, %39, %cst_14 {dimension_numbers = #tpu.dot_dimension_numbers<[1], [0], [0], [1], [0, 0, 1, 1], [], []>} : vector<4x32xf32>, vector<32x8xf32>, vector<4x8xf32> -> vector<4x8xf32>
    %c0_15 = arith.constant 0 : index
    %c0_16 = arith.constant 0 : index
    %42 = vector.load %arg7[%c0_15, %c0_16] : memref<4x1xf32, #tpu.memory_space<vmem>>, vector<4x1xf32>
    %43 = vector.broadcast %42 : vector<4x1xf32> to vector<4x8xf32>
    %44 = arith.addf %41, %43 : vector<4x8xf32>
    %45 = arith.mulf %44, %44 : vector<4x8xf32>
    %46 = arith.mulf %45, %3 : vector<4x8xf32>
    %c0_17 = arith.constant 0 : index
    %c0_18 = arith.constant 0 : index
    %47 = vector.load %arg8[%c0_17, %c0_18] : memref<4x8xf32, #tpu.memory_space<vmem>>, vector<4x8xf32>
    tpu.vector_store %arg8[%c0_17, %c0_18], %46 {strides = array<i32>} : memref<4x8xf32, #tpu.memory_space<vmem>>, vector<4x8xf32>,
    return
  }
  func.func @transform_0(%arg0: i32) -> (i32, i32) {
    %c0_i32 = arith.constant 0 : i32
    %c0_i32_0 = arith.constant 0 : i32
    return %c0_i32, %arg0 : i32, i32
  }
  func.func @transform_1(%arg0: i32) -> (i32, i32) {
    %c0_i32 = arith.constant 0 : i32
    %c0_i32_0 = arith.constant 0 : i32
    %c0_i32_1 = arith.constant 0 : i32
    return %c0_i32, %c0_i32_0 : i32, i32
  }
  func.func @transform_2(%arg0: i32) -> (i32, i32) {
    %c0_i32 = arith.constant 0 : i32
    %c0_i32_0 = arith.constant 0 : i32
    %c0_i32_1 = arith.constant 0 : i32
    return %c0_i32, %c0_i32_0 : i32, i32
  }
  func.func @transform_3(%arg0: i32) -> (i32, i32) {
    %c0_i32 = arith.constant 0 : i32
    %c0_i32_0 = arith.constant 0 : i32
    %c0_i32_1 = arith.constant 0 : i32
    return %c0_i32, %c0_i32_0 : i32, i32
  }
  func.func @transform_4(%arg0: i32) -> (i32, i32) {
    %c0_i32 = arith.constant 0 : i32
    %c0_i32_0 = arith.constant 0 : i32
    %c0_i32_1 = arith.constant 0 : i32
    return %c0_i32, %c0_i32_0 : i32, i32
  }
  func.func @transform_5(%arg0: i32) -> (i32, i32) {
    %c0_i32 = arith.constant 0 : i32
    %c0_i32_0 = arith.constant 0 : i32
    %c0_i32_1 = arith.constant 0 : i32
    return %c0_i32, %c0_i32_0 : i32, i32
  }
  func.func @transform_6(%arg0: i32) -> (i32, i32) {
    %c0_i32 = arith.constant 0 : i32
    %c0_i32_0 = arith.constant 0 : i32
    %c0_i32_1 = arith.constant 0 : i32
    return %c0_i32, %c0_i32_0 : i32, i32
  }
  func.func @transform_7(%arg0: i32) -> (i32, i32) {
    %c0_i32 = arith.constant 0 : i32
    %c0_i32_0 = arith.constant 0 : i32
    return %c0_i32, %arg0 : i32, i32
  }
}

</mosaic_0001>

<bundles_post_ra>
// kernel: tpu_custom_call.1
= control target key start
LH: loop header
LB: loop body
LE: loop exit
PB: predicated region body
PF: predicated region fallthrough
CT: control target
= control target key end

     0   :  { %v512_v2 = vmov 0   ;;  %s641_s0 = inlined_call_operand.vmem [shape: f32[4,8], index: 0, kind: input, shape index: {}]   ;;  %s642_s1 = inlined_call_operand.vmem [shape: f32[32,4], index: 1, kind: input, shape index: {}]   ;;  %s643_s2 = inlined_call_operand.vmem [shape: f32[32,1], index: 2, kind: input, shape index: {}]   ;;  %s644_s3 = inlined_call_operand.vmem [shape: f32[32,32], index: 3, kind: input, shape index: {}]   ;;  %s645_s4 = inlined_call_operand.vmem [shape: f32[32,1], index: 4, kind: input, shape index: {}]   ;;  %s646_s5 = inlined_call_operand.vmem [shape: f32[4,32], index: 5, kind: input, shape index: {}]   ;;  %s647_s6 = inlined_call_operand.vmem [shape: f32[4,1], index: 6, kind: input, shape index: {}]   ;;  %s648_s7 = inlined_call_operand.hbm [shape: f32[4,8], index: 7, kind: output, shape index: {}]  }
   0x1   :  { %v35_v0 = vld [vmem:[%s643_s2] sm:$0xff]  ;;  %473 = vset.pattern.permute.xlu1 %v512_v2  ;;  %472 = vset.pattern.permute.xlu0 %v512_v2  ;;  %v36_v3 = vld [vmem:[%s643_s2 + $0x8] sm:$0xff] }
   0x2   :  { %v31_v1 = vld [vmem:[%s642_s1] sm:$0xff]  ;;  %69 = vperm.xlu1 %473, %v35_v0   ;;  %v32_v4 = vld [vmem:[%s642_s1 + $0x8] sm:$0xff] }
   0x3   :  { %41 = vperm.xlu0 %472, %v31_v1  }
   0x4   :  { %12 = vsyncpa [#allocation3], 0  ;;  %v34_v5 = vld [vmem:[%s642_s1 + $0x18] sm:$0xff]  ;;  %v513_v6 = vmov 1   ;;  %v37_v7 = vld [vmem:[%s643_s2 + $0x10] sm:$0xff]  ;;  %v514_v9 = vmov 2   ;;  %v59_v24 = vlaneseq }
   0x5   :  { %v33_v8 = vld [vmem:[%s642_s1 + $0x10] sm:$0xff]  ;;  %v515_v10 = vmov 3   ;;  %v38_v11 = vld [vmem:[%s643_s2 + $0x18] sm:$0xff]  ;;  %v179_v12 = vld [vmem:[%s644_s3] sm:$0xff]  ;;  %vm207_vm0 = vcmask 261120   ;;  %vm517_vm1 = vmmov 0  }
   0x6   :  { %74 = vperm.xlu1 %473, %v36_v3   ;;  %433 = vmatprep.mubr.msk.f32.mxu0 %vm207_vm0, %v179_v12  ;;  %v184_v13 = vld [vmem:[%s645_s4 + $0x8] sm:$0xff]  ;;  %v183_v14 = vld [vmem:[%s645_s4] sm:$0xff]  ;;  %v185_v15 = vld [vmem:[%s645_s4 + $0x10] sm:$0xff]  ;;  %v60_v27 = vshrl.u32 %v59_v24, 7  ;;  %s519_s10 = smov [#allocation2]   ;;  %vm391_vm2 = vcmask 60416  }
   0x7   :  { %46 = vperm.xlu0 %472, %v32_v4   ;;  %v186_v16 = vld [vmem:[%s645_s4 + $0x18] sm:$0xff]  ;;  %v310_v17 = vld [vmem:[%s647_s6] sm:$0xf]  ;;  %v181_v24 = vld [vmem:[%s644_s3 + $0x10] sm:$0xff]  ;;  %s399_s11 = sshll.u32 %s519_s10, 4  ;;  %s400_s11 = int_to_ptr.vmem [resolvable:$true] %s399_s11 }
   0x8   :  { %v61_v30 = vsub.s32 0, %v60_v27  ;;  %v109_v31 = vsub.s32 1, %v60_v27  ;;  %v606_v32 = vld [vmem:[%s641_s0] sm:$0xf]  ;;  %v137_v36 = vsub.s32 2, %v60_v27  ;;  %v165_v39 = vsub.s32 3, %v60_v27  ;;  %p493_p1 = scmp.lt.s32.totalorder %s400_s11, %s400_s11 }
   0x9   :  { %v518_v27 = vmov 0.0   ;;  %s488_s12 = scalar_lea.vmem %s400_s11, 64 }
   0xa   :  { %474 = vset.pattern.permute.xlu1 %v513_v6  ;;  %v62_v34 = vrot.slane %v606_v32, %v61_v30  ;;  %v110_v35 = vrot.slane %v606_v32, %v109_v31  ;;  %v138_v43 = vrot.slane %v606_v32, %v137_v36  ;;  %v166_v47 = vrot.slane %v606_v32, %v165_v39  ;;  %p489_p0 = scmp.ne.s32.totalorder %s400_s11, %s488_s12  ;;  %p494_p2 = scmp.lt.s32.totalorder %s488_s12, %s488_s12 }
   0xb   :  { %56 = vperm.xlu0 %472, %v34_v5   ;;  %96 = vperm.xlu1 %474, %v32_v4  }
   0xc   :  { %447 = vmatprep.mubr.msk.f32.mxu1 %vm517_vm1, %v518_v27  ;;  %p495_p3 = por %p494_p2, %p493_p1 }
   0xe   :  { %p496_p4 = pnand %p495_p3, %p489_p0 }
   0xf   :  { %79 = vperm.xlu0 %472, %v37_v7   ;;  %475 = vset.pattern.permute.xlu1 %v512_v2 }
  0x10   :  { %51 = vperm.xlu1 %475, %v33_v8  }
  0x13   :  { %477 = vset.pattern.permute.xlu0 %v513_v6 }
  0x14   :  { %92 = vperm.xlu0 %477, %v31_v1   ;;  %476 = vset.pattern.permute.xlu1 %v514_v9 }
  0x15   :  { %120 = vperm.xlu1 %476, %v31_v1  }
  0x18   :  { %100 = vperm.xlu0 %477, %v33_v8  }
  0x19   :  { %124 = vperm.xlu1 %476, %v32_v4  }
  0x1c   :  { %481 = vset.pattern.permute.xlu0 %v515_v10 }
  0x1d   :  { %152 = vperm.xlu0 %481, %v32_v4   ;;  %478 = vset.pattern.permute.xlu1 %v512_v2 }
  0x1e   :  { %84 = vperm.xlu1 %478, %v38_v11  }
  0x21   :  { %156 = vperm.xlu0 %481, %v33_v8  }
  0x22   :  { %479 = vset.pattern.permute.xlu1 %v513_v6 }
  0x23   :  { %104 = vperm.xlu1 %479, %v34_v5  }
  0x25   :  { %484 = vset.pattern.permute.xlu0 %v512_v2 }
  0x26   :  { %189 = vperm.xlu0 %484, %v183_v14  }
  0x27   :  { %480 = vset.pattern.permute.xlu1 %v515_v10 }
  0x28   :  { %148 = vperm.xlu1 %480, %v31_v1  }
  0x2a   :  { %204 = vperm.xlu0 %484, %v186_v16  }
  0x2c   :  { %482 = vset.pattern.permute.xlu1 %v514_v9 }
  0x2d   :  { %128 = vperm.xlu1 %482, %v33_v8  }
  0x31   :  { %132 = vperm.xlu1 %482, %v34_v5  }
  0x35   :  { %483 = vset.pattern.permute.xlu1 %v515_v10 }
  0x36   :  { %160 = vperm.xlu1 %483, %v34_v5  }
  0x3a   :  { %485 = vset.pattern.permute.xlu1 %v512_v2 }
  0x3b   :  { %194 = vperm.xlu1 %485, %v184_v13  }
  0x3f   :  { %199 = vperm.xlu1 %485, %v185_v15  }
  0x43   :  { %313 = vperm.xlu1 %485, %v310_v17  }
  0x81   :  { %v70_v18 = vpop.permute.xlu1 %69 }
  0x82   :  { %v42_v19 = vpop.permute.xlu0 %41 }
  0x83   :  { %v63_v41 = vmul.f32 %v62_v34, %v42_v19 }
  0x85   :  { %v75_v20 = vpop.permute.xlu1 %74  ;;  %v87_v49 = vadd.f32 %v70_v18, %v63_v41 }
  0x86   :  { %v47_v21 = vpop.permute.xlu0 %46 }
  0x87   :  { %v64_v38 = vmul.f32 %v62_v34, %v47_v21 }
  0x89   :  { %v88_v44 = vadd.f32 %v75_v20, %v64_v38 }
  0x8a   :  { %v57_v22 = vpop.permute.xlu0 %56  ;;  %v97_v23 = vpop.permute.xlu1 %96 }
  0x8b   :  { %v112_v42 = vmul.f32 %v110_v35, %v97_v23  ;;  %v66_v6 = vmul.f32 %v62_v34, %v57_v22  ;;  %v180_v22 = vld [vmem:[%s644_s3 + $0x8] sm:$0xff] }
  0x8d   :  { %v116_v50 = vadd.f32 %v112_v42, %v88_v44 }
  0x8e   :  { %v80_v25 = vpop.permute.xlu0 %79 }
  0x8f   :  { %v52_v26 = vpop.permute.xlu1 %51 }
  0x90   :  { %v65_v60 = vmul.f32 %v62_v34, %v52_v26  ;;  %v516_v26 = vmov 0.0|0.0  }
  0x91   :  { %458 = vmatprep.subr.bf16.mxu1 %v516_v26 }
  0x92   :  { %v89_v2 = vadd.f32 %v80_v25, %v65_v60  ;;  %v182_v25 = vld [vmem:[%s644_s3 + $0x18] sm:$0xff] }
  0x93   :  { %v93_v29 = vpop.permute.xlu0 %92 }
  0x94   :  { %v121_v28 = vpop.permute.xlu1 %120  ;;  %v111_v45 = vmul.f32 %v110_v35, %v93_v29 }
  0x95   :  { %v139_v53 = vmul.f32 %v138_v43, %v121_v28 }
  0x96   :  { %v115_v52 = vadd.f32 %v111_v45, %v87_v49 }
  0x97   :  { %v101_v37 = vpop.permute.xlu0 %100 }
  0x98   :  { %v125_v33 = vpop.permute.xlu1 %124  ;;  %v143_v57 = vadd.f32 %v139_v53, %v115_v52  ;;  %v113_v62 = vmul.f32 %v110_v35, %v101_v37 }
  0x99   :  { %v140_v46 = vmul.f32 %v138_v43, %v125_v33 }
  0x9a   :  { %v117_v7 = vadd.f32 %v113_v62, %v89_v2 }
  0x9b   :  { %v144_v54 = vadd.f32 %v140_v46, %v116_v50 }
  0x9c   :  { %v153_v48 = vpop.permute.xlu0 %152 }
  0x9d   :  { %v85_v40 = vpop.permute.xlu1 %84  ;;  %v168_v55 = vmul.f32 %v166_v47, %v153_v48  ;;  %v28_v48 = vsub.f32 0.0, %v606_v32 }
  0x9e   :  { %v90_v10 = vadd.f32 %v85_v40, %v66_v6 }
  0x9f   :  { %v172_v58 = vadd.f32 %v168_v55, %v144_v54  ;;  %v29_v49 = vmul.f32 1.442695, %v28_v48 }
  0xa0   :  { %v157_v5 = vpop.permute.xlu0 %156 }
  0xa1   :  { %v176_v63 = vmax.f32 %v172_v58, 0.0  ;;  %v169_v12 = vmul.f32 %v166_v47, %v157_v5  ;;  %486 = vpow2.f32 %v29_v49 }
  0xa2   :  { %v105_v51 = vpop.permute.xlu1 %104 }
  0xa3   :  { %v114_v8 = vmul.f32 %v110_v35, %v105_v51 }
  0xa5   :  { %v118_v14 = vadd.f32 %v114_v8, %v90_v10  ;;  %v190_v28 = vpop.permute.xlu0 %189 }
  0xa7   :  { %v149_v56 = vpop.permute.xlu1 %148 }
  0xa8   :  { %v167_v59 = vmul.f32 %v166_v47, %v149_v56 }
  0xa9   :  { %v205_v36 = vpop.permute.xlu0 %204 }
  0xaa   :  { %v171_v61 = vadd.f32 %v167_v59, %v143_v57 }
  0xab   :  { %v487_v54 = vpop.eup %486 }
  0xac   :  { %v175_v0 = vmax.f32 %v171_v61, 0.0  ;;  %v129_v1 = vpop.permute.xlu1 %128 }
  0xad   :  { %v141_v3 = vmul.f32 %v138_v43, %v129_v1 }
  0xae   :  { %v450_v4 = vpack.c.bf16 %v176_v63, %v175_v0 }
  0xaf   :  { %v145_v11 = vadd.f32 %v141_v3, %v117_v7 }
  0xb0   :  { %v133_v9 = vpop.permute.xlu1 %132  ;;  %451 = vmatprep.subr.bf16.mxu0 %v450_v4 }
  0xb1   :  { %453 = vmatpush3.bf16.msra.mxu0 %v450_v4  ;;  %v142_v13 = vmul.f32 %v138_v43, %v133_v9  ;;  %v173_v16 = vadd.f32 %v169_v12, %v145_v11 }
  0xb3   :  { %v146_v17 = vadd.f32 %v142_v13, %v118_v14  ;;  %v177_v20 = vmax.f32 %v173_v16, 0.0 }
  0xb5   :  { %v161_v15 = vpop.permute.xlu1 %160 }
  0xb6   :  { %v170_v18 = vmul.f32 %v166_v47, %v161_v15  ;;  %v309_v47 = vld [vmem:[%s646_s5] sm:$0xf] }
  0xb8   :  { %v174_v19 = vadd.f32 %v170_v18, %v146_v17 }
  0xba   :  { %v178_v21 = vmax.f32 %v174_v19, 0.0  ;;  %v195_v29 = vpop.permute.xlu1 %194 }
  0xbc   :  { %v454_v23 = vpack.c.bf16 %v178_v21, %v177_v20 }
  0xbe   :  { %455 = vmatprep.subr.bf16.mxu0 %v454_v23  ;;  %v200_v39 = vpop.permute.xlu1 %199 }
  0xbf   :  { %457 = vmatpush3.bf16.msra.mxu0 %v454_v23 }
  0xc2   :  { %434 = vmatmul.mubr.msk.f32.vlgmr.msra.gmra.mrb[0].mxu0 %vm207_vm0, %v180_v22  ;;  %v314_v50 = vpop.permute.xlu1 %313 }
  0xc3   :  { %436 = vmatprep.mubr.msk.f32.mxu0 %vm207_vm0, %v181_v24 }
  0xc6   :  { %437 = vmatmul.mubr.msk.f32.gmra.mrb[2].mxu0 %vm207_vm0, %v182_v25 }
 0x195   :  { %v435_v30 = vpop.f32.mrb[0].mxu0 }
 0x196   :  { %v292_v31 = vadd.f32 %v435_v30, %v195_v29  ;;  %v286_v33 = vpop.f32.mrb[1].mxu0 }
 0x197   :  { %v287_v34 = vadd.f32 %v286_v33, %v190_v28 }
 0x198   :  { %v306_v35 = vmax.f32 %v292_v31, 0.0 }
 0x199   :  { %v305_v37 = vmax.f32 %v287_v34, 0.0  ;;  %v438_v38 = vpop.f32.mrb[2].mxu0 }
 0x19a   :  { %v302_v40 = vadd.f32 %v438_v38, %v205_v36  ;;  %v296_v41 = vpop.f32.mrb[3].mxu0 }
 0x19b   :  { %v297_v42 = vadd.f32 %v296_v41, %v200_v39  ;;  %v459_v43 = vpack.c.bf16 %v306_v35, %v305_v37 }
 0x19c   :  { %v308_v44 = vmax.f32 %v302_v40, 0.0 }
 0x19d   :  { %v307_v45 = vmax.f32 %v297_v42, 0.0  ;;  %460 = vmatpush3.bf16.msra.mxu1 %v459_v43 }
 0x19e   :  { %461 = vmatprep.subr.bf16.mxu1 %v516_v26 }
 0x19f   :  { %v462_v46 = vpack.c.bf16 %v308_v44, %v307_v45 }
 0x1a1   :  { %463 = vmatpush3.bf16.msra.mxu1 %v462_v46 }
 0x1a4   :  { %448 = vmatmul.mubr.msk.f32.vlgmr.msra.gmra.mrb[0].mxu1 %vm207_vm0, %v309_v47 }
 0x277   :  { %v385_v51 = vpop.f32.mrb[0].mxu1 }
 0x278   :  { %v386_v52 = vadd.f32 %v385_v51, %v314_v50  ;;  %v449_v53 = vpop.f32.mrb[1].mxu1 }
 0x27a   :  { %v389_v55 = vmul.f32 %v386_v52, %v386_v52 }
 0x27c   :  { %v390_v56 = vmul.f32 %v487_v54, %v389_v55 }
 0x27e   :  { %392 = vst.msk [vmem:[#allocation2] sm:$0xf] %vm391_vm2, %v390_v56 }
 0x27f   :  { %499 = shalt.err (!%p496_p4)
}
 0x280   :  { %s500_s14 = scalar_lea.hbm %s648_s7, 64 }
 0x281   :  { %p501_p5 = scmp.ne.s32.totalorder %s648_s7, %s500_s14  ;;  %p504_p6 = scmp.lt.u32.totalorder %s500_s14, %s648_s7 }
 0x283   :  { %p506_p7 = pnand %p504_p6, %p501_p5 }
 0x285   :  { %509 = shalt.err (!%p506_p7)
}
 0x286   :  { %402 = dma.vmem_to_hbm [thread:$0]  %s400_s11, 64, %s648_s7, [#allocation3]  }
 0x287   :  { %510 = dma.done.wait [#allocation3], 64  }
 0x288   :  { %511 = vsyncadd [#allocation3], 4294967232 }
 0x289   :  { %406 = vsyncpa [#allocation3], 1 }

</bundles_post_ra>
